<compile_context>
chip_gen: v6e
topology: v6e:2x2x1
jax: 0.10.0
libtpu: 0.0.40
codegen_flags: <defaults>
</compile_context>

<pallas_src>
import math
from functools import partial

import jax
import jax.numpy as jnp
from jax import lax
from jax.experimental import pallas as pl
from jax.experimental.pallas import tpu as pltpu


def _rope_cache_kernel(helpers_ref, cos_ref, sin_ref, *, k, tile_rows, inv_pi):
    """Fill one (tile_rows, width) tile of the packed cos/sin RoPE cache.

    helpers_ref : (2, width) f32  -- row 0: position offset of lane c (= c // dim)
                                     row 1: packed inv_freq (= inv_freq_full[c % dim])
    cos_ref     : (tile_rows, width) out
    sin_ref     : (tile_rows, width) out

    Packed layout: stored element (r, c) corresponds to position
    p = r*k + c//dim and frequency index j = c % dim of the (seq, dim) cache.
    """
    i = pl.program_id(0)

    pos_off = helpers_ref[0:1, :]      # (1, width)
    inv_freq = helpers_ref[1:2, :]     # (1, width)

    # Absolute positions covered by this tile (exact small integers in f32).
    row = lax.broadcasted_iota(jnp.int32, (tile_rows, 1), 0).astype(jnp.float32)
    first = (i * (tile_rows * k)).astype(jnp.float32)
    pos = first + row * float(k) + pos_off                    # (tile_rows, width)

    # Position interpolation: t = pos / pi_ratio, computed as a multiply by the
    # reciprocal (<= 1 ulp off the reference division; covered by tolerances).
    angle = (pos * inv_pi) * inv_freq

    cos_ref[...] = jnp.cos(angle).astype(cos_ref.dtype)
    sin_ref[...] = jnp.sin(angle).astype(sin_ref.dtype)


def _choose_packing(dim):
    """Positions packed per stored row so the row width k*dim is a multiple of
    128 lanes and >= 512 (full-width, unmasked vector stores)."""
    if dim % 128 == 0:
        return 1                                # already lane-aligned
    k = 128 // math.gcd(dim, 128)
    while k * dim < 512:
        k *= 2
    return k


def _choose_tile_rows(n_rows, width, itemsize):
    """Largest sequence tile keeping <= ~4 MiB per pipelined output buffer
    (sized in the *output* dtype), while aiming for >= 4 grid steps so v7x's
    two TensorCores each get >= 2 tiles to overlap compute with writeback."""
    if n_rows <= 16:
        return n_rows                            # tiny cache: single small tile
    max_rows = (4 << 20) // (width * itemsize)
    max_rows = max(16, max_rows - max_rows % 16)
    target = -(-n_rows // 4)                     # aim for >= 4 grid steps
    target = -(-target // 16) * 16               # 16-row aligned (bf16-safe sublanes)
    return min(max_rows, target)


def condense_rotary_embedding(x, seq_len, *, dim, pi_ratio, ntk_ratio,
                              max_position_embeddings=2048, base=10000):
    """Pallas equivalent of CondenseRotaryEmbedding.forward(x, seq_len).

    Returns (cos, sin), each of shape (1, 1, seq_len, dim) and dtype x.dtype.
    """
    del max_position_embeddings  # cache is built functionally for exactly seq_len rows
    out_dtype = x.dtype
    itemsize = jnp.dtype(out_dtype).itemsize

    # ---- __init__ glue: NTK-scaled base and inverse frequencies -------------
    ntk_base = base * (ntk_ratio ** (dim / (dim - 2)))
    inv_freq = 1.0 / (ntk_base ** (jnp.arange(0, dim, 2, dtype=jnp.float32) / dim))  # (dim//2,)

    # ---- lane-dense packing + tiling -----------------------------------------
    k = _choose_packing(dim)
    width = k * dim
    n_rows = -(-seq_len // k)                  # padded packed rows (tail sliced off below)
    tile_rows = _choose_tile_rows(n_rows, width, itemsize)
    num_tiles = -(-n_rows // tile_rows)        # ragged final block handled by Pallas

    # Per-lane helpers: emb = cat(freqs, freqs) => inv_freq_full[c % dim];
    # position offset of lane c inside a packed row is c // dim.
    inv_freq_row = jnp.tile(jnp.concatenate([inv_freq, inv_freq], axis=0), k)        # (width,)
    pos_off_row = (jnp.arange(width, dtype=jnp.int32) // dim).astype(jnp.float32)    # (width,)
    helpers = jnp.stack([pos_off_row, inv_freq_row], axis=0)                          # (2, width)

    kernel = partial(_rope_cache_kernel, k=k, tile_rows=tile_rows,
                     inv_pi=float(1.0 / pi_ratio))

    cost = pl.CostEstimate(
        flops=3 * n_rows * width,
        transcendentals=2 * n_rows * width,
        bytes_accessed=2 * n_rows * width * itemsize + 2 * width * 4)

    cos2d, sin2d = pl.pallas_call(
        kernel,
        out_shape=(jax.ShapeDtypeStruct((n_rows, width), out_dtype),
                   jax.ShapeDtypeStruct((n_rows, width), out_dtype)),
        grid=(num_tiles,),
        in_specs=[pl.BlockSpec((2, width), lambda i: (0, 0))],
        out_specs=(pl.BlockSpec((tile_rows, width), lambda i: (i, 0)),
                   pl.BlockSpec((tile_rows, width), lambda i: (i, 0))),
        compiler_params=pltpu.CompilerParams(
            dimension_semantics=("parallel",),
            vmem_limit_bytes=48 * 1024 * 1024),
        cost_estimate=cost,
    )(helpers)

    # Packed rows are a row-major view of (n_rows*k, dim); slice off any padded
    # tail positions before exposing the (seq_len, dim) cache.
    cos = cos2d.reshape(n_rows * k, dim)[:seq_len].reshape(1, 1, seq_len, dim)
    sin = sin2d.reshape(n_rows * k, dim)[:seq_len].reshape(1, 1, seq_len, dim)
    return cos, sin


def _reference(x, seq_len, *, dim, pi_ratio, ntk_ratio,
               max_position_embeddings=2048, base=10000):
    ntk_base = base * (ntk_ratio ** (dim / (dim - 2)))
    inv_freq = 1.0 / (ntk_base ** (jnp.arange(0, dim, 2, dtype=jnp.float32) / dim))
    t = jnp.arange(seq_len, dtype=jnp.float32) / pi_ratio
    freqs = jnp.einsum("i,j->ij", t, inv_freq)
    emb = jnp.concatenate([freqs, freqs], axis=-1)
    return (jnp.cos(emb)[None, None].astype(x.dtype),
            jnp.sin(emb)[None, None].astype(x.dtype))


def _check(x, seq_len, dim, pi_ratio, ntk_ratio, atol, rtol):
    cos, sin = condense_rotary_embedding(
        x, seq_len, dim=dim, pi_ratio=pi_ratio, ntk_ratio=ntk_ratio)
    cos, sin = jax.block_until_ready((cos, sin))
    cos_ref, sin_ref = _reference(
        x, seq_len, dim=dim, pi_ratio=pi_ratio, ntk_ratio=ntk_ratio)
    assert cos.shape == (1, 1, seq_len, dim) and sin.shape == (1, 1, seq_len, dim)
    assert cos.dtype == x.dtype and sin.dtype == x.dtype
    assert jnp.allclose(cos.astype(jnp.float32), cos_ref.astype(jnp.float32),
                        atol=atol, rtol=rtol)
    assert jnp.allclose(sin.astype(jnp.float32), sin_ref.astype(jnp.float32),
                        atol=atol, rtol=rtol)


if __name__ == "__main__":
    key = jax.random.PRNGKey(0)

    # Config 1: small spec-like case (dim=32 < 128 -> lane packing, k=16, width=512).
    batch, heads, seq_len, dim = 2, 4, 16, 32
    x = jax.random.normal(key, (batch, heads, seq_len, dim), dtype=jnp.float32)
    _check(x, seq_len, dim, pi_ratio=2.0, ntk_ratio=2.0, atol=1e-5, rtol=1e-5)

    # Config 2: lane-aligned dim=128 (no packing), multi-tile grid with a ragged
    # final block.
    seq_len2, dim2 = 72, 128
    x2 = jax.random.normal(key, (1, 1, seq_len2, dim2), dtype=jnp.float32)
    _check(x2, seq_len2, dim2, pi_ratio=4.0, ntk_ratio=1.0, atol=1e-4, rtol=1e-4)

    # Config 3: bf16 output dtype, dim=64 packed to width 512, multi-tile grid.
    seq_len3, dim3 = 256, 64
    x3 = jax.random.normal(key, (1, 2, seq_len3, dim3), dtype=jnp.bfloat16)
    _check(x3, seq_len3, dim3, pi_ratio=2.0, ntk_ratio=2.0, atol=2e-2, rtol=2e-2)

    # Config 4: seq_len not divisible by the packing factor (padded tail row is
    # generated lane-dense and sliced off in the wrapper).
    seq_len4, dim4 = 20, 32
    x4 = jax.random.normal(key, (1, 1, seq_len4, dim4), dtype=jnp.float32)
    _check(x4, seq_len4, dim4, pi_ratio=2.0, ntk_ratio=2.0, atol=1e-5, rtol=1e-5)

    print("KERNEL_OK")
</pallas_src>

<mosaic_0001>
module attributes {stable_mosaic.version = 11 : i64} {
  func.func @_rope_cache_kernel(%arg0: i32, %arg1: memref<2x512xf32, #tpu.memory_space<vmem>>, %arg2: memref<1x512xf32, #tpu.memory_space<vmem>>, %arg3: memref<1x512xf32, #tpu.memory_space<vmem>>) attributes {dimension_semantics = [#tpu.dimension_semantics<parallel>], iteration_bounds = array<i64: 1>, scalar_prefetch = 0 : i64, scratch_operands = 0 : i64, tpu.core_type = #tpu.core_type<tc>, window_params = [{pipeline_mode = #tpu.pipeline_mode<synchronous>, transform_indices = @transform_0, window_bounds = array<i64: 2, 512>}, {transform_indices = @transform_1, window_bounds = array<i64: 1, 512>}, {transform_indices = @transform_2, window_bounds = array<i64: 1, 512>}]} {
    %c0 = arith.constant 0 : index
    %c0_0 = arith.constant 0 : index
    %0 = vector.load %arg1[%c0, %c0_0] : memref<2x512xf32, #tpu.memory_space<vmem>>, vector<1x512xf32>
    %c1 = arith.constant 1 : index
    %c0_1 = arith.constant 0 : index
    %1 = vector.load %arg1[%c1, %c0_1] : memref<2x512xf32, #tpu.memory_space<vmem>>, vector<1x512xf32>
    %2 = tpu.iota {dimensions = array<i32: 0>} : vector<1x1xi32>
    %3 = arith.sitofp %2 : vector<1x1xi32> to vector<1x1xf32>
    %c16_i32 = arith.constant 16 : i32
    %4 = arith.muli %arg0, %c16_i32 : i32
    %5 = arith.sitofp %4 : i32 to f32
    %cst = arith.constant 1.600000e+01 : f32
    %6 = vector.broadcast %cst : f32 to vector<1x1xf32>
    %7 = arith.mulf %3, %6 : vector<1x1xf32>
    %8 = vector.broadcast %5 : f32 to vector<1x1xf32>
    %9 = arith.addf %8, %7 : vector<1x1xf32>
    %10 = vector.broadcast %9 : vector<1x1xf32> to vector<1x512xf32>
    %11 = arith.addf %10, %0 : vector<1x512xf32>
    %cst_2 = arith.constant 5.000000e-01 : f32
    %12 = vector.broadcast %cst_2 : f32 to vector<1x512xf32>
    %13 = arith.mulf %11, %12 : vector<1x512xf32>
    %14 = arith.mulf %13, %1 : vector<1x512xf32>
    %15 = math.cos %14 : vector<1x512xf32>
    %c0_3 = arith.constant 0 : index
    %c0_4 = arith.constant 0 : index
    %16 = vector.load %arg2[%c0_3, %c0_4] : memref<1x512xf32, #tpu.memory_space<vmem>>, vector<1x512xf32>
    tpu.vector_store %arg2[%c0_3, %c0_4], %15 {strides = array<i32>} : memref<1x512xf32, #tpu.memory_space<vmem>>, vector<1x512xf32>,
    %17 = math.sin %14 : vector<1x512xf32>
    %c0_5 = arith.constant 0 : index
    %c0_6 = arith.constant 0 : index
    %18 = vector.load %arg3[%c0_5, %c0_6] : memref<1x512xf32, #tpu.memory_space<vmem>>, vector<1x512xf32>
    tpu.vector_store %arg3[%c0_5, %c0_6], %17 {strides = array<i32>} : memref<1x512xf32, #tpu.memory_space<vmem>>, vector<1x512xf32>,
    return
  }
  func.func @transform_0(%arg0: i32) -> (i32, i32) {
    %c0_i32 = arith.constant 0 : i32
    %c0_i32_0 = arith.constant 0 : i32
    %c0_i32_1 = arith.constant 0 : i32
    return %c0_i32, %c0_i32_0 : i32, i32
  }
  func.func @transform_1(%arg0: i32) -> (i32, i32) {
    %c0_i32 = arith.constant 0 : i32
    %c0_i32_0 = arith.constant 0 : i32
    return %arg0, %c0_i32 : i32, i32
  }
  func.func @transform_2(%arg0: i32) -> (i32, i32) {
    %c0_i32 = arith.constant 0 : i32
    %c0_i32_0 = arith.constant 0 : i32
    return %arg0, %c0_i32 : i32, i32
  }
}

</mosaic_0001>

<bundles_post_ra>
// kernel: tpu_custom_call.1
= control target key start
LH: loop header
LB: loop body
LE: loop exit
PB: predicated region body
PF: predicated region fallthrough
CT: control target
= control target key end

     0   :  { %8 = vsyncpa [#allocation3], 0  ;;  %s1519_s0 = inlined_call_operand.hbm [shape: f32[2,512], index: 0, kind: input, shape index: {}]   ;;  %s1520_s1 = inlined_call_operand.hbm [shape: f32[1,512], index: 1, kind: output, shape index: {0}]   ;;  %s1521_s2 = inlined_call_operand.hbm [shape: f32[1,512], index: 2, kind: output, shape index: {1}]  }
   0x1   :  { %9 = vsyncpa [#allocation4], 0 }
   0x2   :  { %10 = vsyncpa [#allocation7], 0  ;;  %s1150_s9 = smov [#allocation2]  }
   0x3   :  { %s17_s10 = sshll.u32 %s1150_s9, 4  ;;  %s18_s10 = int_to_ptr.vmem [resolvable:$true] %s17_s10 }
   0x4   :  { %s1092_s11 = scalar_lea.vmem %s18_s10, 128  ;;  %p1097_p1 = scmp.lt.s32.totalorder %s18_s10, %s18_s10 }
   0x5   :  { %p1093_p0 = scmp.ne.s32.totalorder %s18_s10, %s1092_s11  ;;  %p1098_p2 = scmp.lt.s32.totalorder %s1092_s11, %s1092_s11 }
   0x7   :  { %p1099_p3 = por %p1098_p2, %p1097_p1 }
   0x9   :  { %p1100_p4 = pnand %p1099_p3, %p1093_p0 }
   0xb   :  { %1103 = shalt.err (!%p1100_p4)
}
   0xc   :  { %20 = dma.hbm_to_vmem [thread:$0]  %s1519_s0, 128, %s18_s10, [#allocation3]  }
   0xd   :  { %1144 = dma.done.wait [#allocation3], 128  }
   0xe   :  { %1145 = vsyncadd [#allocation3], 4294967168  ;;  %v27_v0 = vlaneseq  ;;  %v24_v7 = vld [vmem:[#allocation2] ss:$2 sm:$0xf]  ;;  %s1158_s0 = smov [#allocation5]  }
   0xf   :  { %v26_v8 = vld [vmem:[#allocation2 + $0x1] ss:$2 sm:$0xf]  ;;  %v1151_v55 = vmov 683565275   ;;  %s987_s14 = sshll.u32 %s1158_s0, 4  ;;  %s988_s14 = int_to_ptr.vmem [resolvable:$true] %s987_s14 }
  0x10   :  { %v1179_v1 = vshrl.u32 %v27_v0, 7  ;;  %v1152_v57 = vmov 2475754826   ;;  %v1153_v59 = vmov 2131351028   ;;  %s1159_s15 = smov [#allocation6]   ;;  %p1109_p6 = scmp.lt.s32.totalorder %s988_s14, %s988_s14 }
  0x11   :  { %v1154_v61 = vmov 2102212464   ;;  %v1155_v63 = vmov 920167782   ;;  %s997_s16 = sshll.u32 %s1159_s15, 4  ;;  %s1104_s17 = scalar_lea.vmem %s988_s14, 64  ;;  %s998_s16 = int_to_ptr.vmem [resolvable:$true] %s997_s16 }
  0x12   :  { %v29_v2 = vcvt.s32.f32 %v1179_v1  ;;  %v38_v3 = vsub.s32 0, %v1179_v1  ;;  %v42_v4 = vsub.s32 1, %v1179_v1  ;;  %v46_v5 = vsub.s32 2, %v1179_v1  ;;  %p1105_p5 = scmp.ne.s32.totalorder %s988_s14, %s1104_s17  ;;  %p1110_p7 = scmp.lt.s32.totalorder %s1104_s17, %s1104_s17 }
  0x13   :  { %v50_v21 = vsub.s32 3, %v1179_v1 }
  0x14   :  { %v32_v6 = vmul.f32 16.0, %v29_v2  ;;  %v39_v9 = vrot.slane %v24_v7, %v38_v3  ;;  %v43_v10 = vrot.slane %v24_v7, %v42_v4  ;;  %v47_v11 = vrot.slane %v24_v7, %v46_v5  ;;  %p1111_p8 = por %p1110_p7, %p1109_p6 }
  0x15   :  { %v68_v12 = vrot.slane %v26_v8, %v38_v3  ;;  %v72_v16 = vrot.slane %v26_v8, %v42_v4  ;;  %v76_v17 = vrot.slane %v26_v8, %v46_v5  ;;  %v51_v29 = vrot.slane %v24_v7, %v50_v21 }
  0x16   :  { %v56_v13 = vadd.f32 %v39_v9, %v32_v6  ;;  %v57_v14 = vadd.f32 %v43_v10, %v32_v6  ;;  %v58_v15 = vadd.f32 %v47_v11, %v32_v6  ;;  %v1201_v44 = vrot.slane %v26_v8, %v50_v21  ;;  %p1112_p9 = pnand %p1111_p8, %p1105_p5 }
  0x17   :  { %v59_v38 = vadd.f32 %v51_v29, %v32_v6  ;;  %v1156_v9 = vmov 1326507024  }
  0x18   :  { %v60_v18 = vmul.f32 0.5, %v56_v13  ;;  %v61_v19 = vmul.f32 0.5, %v57_v14  ;;  %v62_v20 = vmul.f32 0.5, %v58_v15 }
  0x19   :  { %v1203_v46 = vmul.f32 0.5, %v59_v38 }
  0x1a   :  { %v1186_v22 = vmul.f32 %v68_v12, %v60_v18  ;;  %v1188_v23 = vmul.f32 %v72_v16, %v61_v19  ;;  %v1190_v24 = vmul.f32 %v76_v17, %v62_v20 }
  0x1c   :  { %v89_v25 = vand.u32 2147483647, %v1186_v22  ;;  %v92_v26 = vand.u32 2139095040, %v1186_v22  ;;  %v192_v27 = vand.u32 2147483647, %v1188_v23  ;;  %v195_v28 = vand.u32 2139095040, %v1188_v23 }
  0x1d   :  { %v298_v34 = vand.u32 2139095040, %v1190_v24 }
  0x1e   :  { %v93_v30 = vshrl.u32 %v92_v26, 23  ;;  %v96_v31 = vand.u32 8388607, %v89_v25  ;;  %v196_v32 = vshrl.u32 %v195_v28, 23  ;;  %v199_v33 = vand.u32 8388607, %v192_v27 }
  0x1f   :  { %v299_v37 = vshrl.u32 %v298_v34, 23 }
  0x20   :  { %v1010_v35 = vadd.s32 4294967169, %v93_v30  ;;  %v1014_v36 = vadd.s32 4294967169, %v196_v32  ;;  %v97_v40 = vor.u32 8388608, %v96_v31  ;;  %v200_v41 = vor.u32 8388608, %v199_v33 }
  0x21   :  { %v1018_v43 = vadd.s32 4294967169, %v299_v37 }
  0x22   :  { %v99_v39 = vadd.s32 1, %v1010_v35  ;;  %v202_v42 = vadd.s32 1, %v1014_v36  ;;  %v1205_v50 = vshll.u32 %v97_v40, 8  ;;  %v1207_v52 = vshll.u32 %v200_v41, 8 }
  0x23   :  { %v1209_v53 = vadd.s32 1, %v1018_v43 }
  0x24   :  { %vm100_vm0 = vcmp.gt.s32.totalorder %v99_v39, 0  ;;  %vm203_vm1 = vcmp.gt.s32.totalorder %v202_v42, 0 }
  0x25   :  { %v101_v45 = vsel %vm100_vm0, %v99_v39, 0  ;;  %v204_v49 = vsel %vm203_vm1, %v202_v42, 0  ;;  %vm306_vm6 = vcmp.gt.s32.totalorder %v1209_v53, 0 }
  0x26   :  { %v102_v47 = vshrl.u32 %v101_v45, 5  ;;  %v103_v48 = vand.u32 31, %v101_v45  ;;  %v206_v51 = vand.u32 31, %v204_v49  ;;  %v1216_v3 = vshrl.u32 %v204_v49, 5 }
  0x28   :  { %v104_v54 = vsub.s32 32, %v103_v48  ;;  %v106_v56 = vshll.u32 %v1151_v55, %v103_v48  ;;  %v109_v58 = vshll.u32 %v1152_v57, %v103_v48  ;;  %v112_v60 = vshll.u32 %v1153_v59, %v103_v48 }
  0x29   :  { %v115_v62 = vshll.u32 %v1154_v61, %v103_v48  ;;  %v118_v2 = vshll.u32 %v1155_v63, %v103_v48  ;;  %vm121_vm2 = vcmp.lt.s32.totalorder %v102_v47, 1  ;;  %vm122_vm3 = vcmp.lt.s32.totalorder %v102_v47, 2 }
  0x2a   :  { %v105_v4 = vshrl.u32 %v1151_v55, %v104_v54  ;;  %v107_v5 = vshrl.u32 %v1152_v57, %v104_v54  ;;  %v110_v6 = vshrl.u32 %v1153_v59, %v104_v54  ;;  %v113_v7 = vshrl.u32 %v1154_v61, %v104_v54 }
  0x2b   :  { %v116_v8 = vshrl.u32 %v1155_v63, %v104_v54  ;;  %v119_v10 = vshrl.u32 %v1156_v9, %v104_v54  ;;  %vm124_vm4 = vcmp.lt.s32.totalorder %v102_v47, 4  ;;  %v207_v14 = vsub.s32 32, %v206_v51 }
  0x2c   :  { %v108_v11 = vor.u32 %v107_v5, %v106_v56  ;;  %v111_v12 = vor.u32 %v110_v6, %v109_v58  ;;  %v114_v13 = vor.u32 %v113_v7, %v112_v60  ;;  %vm123_vm5 = vcmp.lt.s32.totalorder %v102_v47, 3 }
  0x2d   :  { %v117_v15 = vor.u32 %v116_v8, %v115_v62  ;;  %v120_v16 = vor.u32 %v119_v10, %v118_v2  ;;  %v209_v17 = vshll.u32 %v1151_v55, %v206_v51  ;;  %v212_v30 = vshll.u32 %v1152_v57, %v206_v51 }
  0x2e   :  { %v125_v18 = vsel %vm121_vm2, %v105_v4, %v108_v11  ;;  %v126_v19 = vsel %vm124_vm4, %v114_v13, 2102212464  ;;  %v129_v20 = vsel %vm121_vm2, %v108_v11, %v111_v12  ;;  %v133_v21 = vsel %vm121_vm2, %v111_v12, %v114_v13 }
  0x2f   :  { %v127_v26 = vsel %vm123_vm5, %v111_v12, %v126_v19  ;;  %v130_v28 = vsel %vm124_vm4, %v117_v15, 920167782  ;;  %v134_v29 = vsel %vm124_vm4, %v120_v16, 1326507024  ;;  %v208_v33 = vshrl.u32 %v1151_v55, %v207_v14 }
  0x30   :  { %v131_v31 = vsel %vm123_vm5, %v114_v13, %v130_v28  ;;  %v135_v32 = vsel %vm123_vm5, %v117_v15, %v134_v29  ;;  %v210_v34 = vshrl.u32 %v1152_v57, %v207_v14  ;;  %v128_v35 = vsel %vm122_vm3, %v125_v18, %v127_v26 }
  0x31   :  { %v132_v36 = vsel %vm122_vm3, %v129_v20, %v131_v31  ;;  %v136_v37 = vsel %vm122_vm3, %v133_v21, %v135_v32  ;;  %v213_v38 = vshrl.u32 %v1153_v59, %v207_v14  ;;  %v215_v48 = vshll.u32 %v1153_v59, %v206_v51 }
  0x32   :  { %v1237_v39 = vmul.u32.u64.low %v1205_v50, %v136_v37  ;;  %v1238_v40 = vmul.u32.u64.high %v1205_v50, %v136_v37, %v1237_v39  ;;  %v1241_v41 = vmul.u32.u64.low %v1205_v50, %v132_v36  ;;  %v1242_v42 = vmul.u32.u64.high %v1205_v50, %v132_v36, %v1241_v41 }
  0x33   :  { %v211_v43 = vor.u32 %v210_v34, %v209_v17  ;;  %v214_v45 = vor.u32 %v213_v38, %v212_v30  ;;  %v216_v49 = vshrl.u32 %v1154_v61, %v207_v14  ;;  %v218_v47 = vshll.u32 %v1154_v61, %v206_v51 }
  0x34   :  { %v219_v54 = vshrl.u32 %v1155_v63, %v207_v14  ;;  %v221_v56 = vshll.u32 %v1155_v63, %v206_v51  ;;  %v222_v58 = vshrl.u32 %v1156_v9, %v207_v14  ;;  %v144_v60 = vmul.u32 %v1205_v50, %v128_v35 }
  0x35   :  { %v217_v62 = vor.u32 %v216_v49, %v215_v48  ;;  %vm224_vm7 = vcmp.lt.s32.totalorder %v1216_v3, 1  ;;  %vm225_vm8 = vcmp.lt.s32.totalorder %v1216_v3, 2  ;;  %vm146_vm9 = vc.u32 %v1238_v40, %v1241_v41 }
  0x36   :  { %v147_v2 = vadd.s32 1, %v1242_v42  ;;  %v220_v4 = vor.u32 %v219_v54, %v218_v47  ;;  %vm226_vm10 = vcmp.lt.s32.totalorder %v1216_v3, 3  ;;  %v223_v5 = vor.u32 %v222_v58, %v221_v56 }
  0x37   :  { %vm227_vm11 = vcmp.lt.s32.totalorder %v1216_v3, 4  ;;  %v228_v51 = vsel %vm224_vm7, %v208_v33, %v211_v43  ;;  %v232_v6 = vsel %vm224_vm7, %v211_v43, %v214_v45  ;;  %v236_v10 = vsel %vm224_vm7, %v214_v45, %v217_v62 }
  0x38   :  { %v148_v50 = vsel %vm146_vm9, %v147_v2, %v1242_v42  ;;  %v229_v7 = vsel %vm227_vm11, %v217_v62, 2102212464  ;;  %v233_v8 = vsel %vm227_vm11, %v220_v4, 920167782  ;;  %v237_v14 = vsel %vm227_vm11, %v223_v5, 1326507024 }
  0x39   :  { %v149_v11 = vadd.s32 %v148_v50, %v144_v60  ;;  %v230_v12 = vsel %vm226_vm10, %v214_v45, %v229_v7  ;;  %v234_v13 = vsel %vm226_vm10, %v217_v62, %v233_v8  ;;  %v238_v17 = vsel %vm226_vm10, %v220_v4, %v237_v14 }
  0x3a   :  { %v231_v15 = vsel %vm225_vm8, %v228_v51, %v230_v12  ;;  %v235_v16 = vsel %vm225_vm8, %v232_v6, %v234_v13  ;;  %v307_v18 = vsel %vm306_vm6, %v1209_v53, 0  ;;  %v239_v20 = vsel %vm225_vm8, %v236_v10, %v238_v17 }
  0x3b   :  { %v150_v19 = vadd.s32 536870912, %v149_v11  ;;  %v1270_v21 = vmul.u32.u64.low %v1207_v52, %v235_v16  ;;  %v1271_v26 = vmul.u32.u64.high %v1207_v52, %v235_v16, %v1270_v21  ;;  %v1280_v30 = vmul.f32 %v1201_v44, %v1203_v46 }
  0x3c   :  { %v1275_v28 = vmul.u32.u64.low %v1207_v52, %v239_v20  ;;  %v1276_v29 = vmul.u32.u64.high %v1207_v52, %v239_v20, %v1275_v28  ;;  %v295_v53 = vand.u32 2147483647, %v1190_v24  ;;  %v309_v32 = vand.u32 31, %v307_v18 }
  0x3d   :  { %v1282_v31 = vshrl.u32 %v150_v19, 30  ;;  %v247_v3 = vmul.u32 %v1207_v52, %v231_v15  ;;  %v250_v34 = vadd.s32 1, %v1271_v26  ;;  %v401_v37 = vand.u32 2139095040, %v1280_v30 }
  0x3e   :  { %v310_v35 = vsub.s32 32, %v309_v32  ;;  %vm249_vm12 = vc.u32 %v1276_v29, %v1270_v21  ;;  %v302_v46 = vand.u32 8388607, %v295_v53  ;;  %v308_v39 = vshrl.u32 %v307_v18, 5 }
  0x3f   :  { %v152_v33 = vshll.u32 %v1282_v31, 30  ;;  %v251_v44 = vsel %vm249_vm12, %v250_v34, %v1271_v26  ;;  %v312_v52 = vshll.u32 %v1151_v55, %v309_v32  ;;  %v315_v42 = vshll.u32 %v1152_v57, %v309_v32 }
  0x40   :  { %v252_v38 = vadd.s32 %v251_v44, %v247_v3  ;;  %v313_v43 = vshrl.u32 %v1152_v57, %v310_v35  ;;  %v316_v45 = vshrl.u32 %v1153_v59, %v310_v35  ;;  %v318_v48 = vshll.u32 %v1153_v59, %v309_v32 }
  0x41   :  { %v1290_v36 = vsub.s32 %v149_v11, %v152_v33  ;;  %v319_v49 = vshrl.u32 %v1154_v61, %v310_v35  ;;  %v321_v54 = vshll.u32 %v1154_v61, %v309_v32  ;;  %v303_v58 = vor.u32 8388608, %v302_v46 }
  0x42   :  { %v253_v47 = vadd.s32 536870912, %v252_v38  ;;  %v402_v60 = vshrl.u32 %v401_v37, 23  ;;  %v322_v2 = vshrl.u32 %v1155_v63, %v310_v35  ;;  %v324_v4 = vshll.u32 %v1155_v63, %v309_v32 }
  0x43   :  { %v155_v56 = vsub.s32 0, %v1290_v36  ;;  %vm330_vm13 = vcmp.lt.s32.totalorder %v308_v39, 4  ;;  %v314_v5 = vor.u32 %v313_v43, %v312_v52  ;;  %v317_v51 = vor.u32 %v316_v45, %v315_v42 }
  0x44   :  { %v1304_v62 = vshrl.u32 %v253_v47, 30  ;;  %v320_v6 = vor.u32 %v319_v49, %v318_v48  ;;  %v325_v50 = vshrl.u32 %v1156_v9, %v310_v35  ;;  %v323_v8 = vor.u32 %v322_v2, %v321_v54 }
  0x45   :  { %vm327_vm14 = vcmp.lt.s32.totalorder %v308_v39, 1  ;;  %vm329_vm15 = vcmp.lt.s32.totalorder %v308_v39, 3  ;;  %v1011_v10 = vmin.u32 %v155_v56, %v1290_v36  ;;  %v311_v13 = vshrl.u32 %v1151_v55, %v310_v35 }
  0x46   :  { %v255_v7 = vshll.u32 %v1304_v62, 30  ;;  %v326_v11 = vor.u32 %v325_v50, %v324_v4  ;;  %vm328_vm0 = vcmp.lt.s32.totalorder %v308_v39, 2  ;;  %v336_v14 = vsel %vm330_vm13, %v323_v8, 920167782 }
  0x47   :  { %v332_v15 = vsel %vm330_vm13, %v320_v6, 2102212464  ;;  %v335_v16 = vsel %vm327_vm14, %v314_v5, %v317_v51  ;;  %v337_v17 = vsel %vm329_vm15, %v320_v6, %v336_v14  ;;  %v339_v20 = vsel %vm327_vm14, %v317_v51, %v320_v6 }
  0x48   :  { %v1311_v12 = vsub.s32 %v252_v38, %v255_v7  ;;  %v340_v18 = vsel %vm330_vm13, %v326_v11, 1326507024  ;;  %v343_v26 = vshll.u32 %v303_v58, 8  ;;  %v1022_v28 = vadd.s32 4294967169, %v402_v60 }
  0x49   :  { %v157_v32 = vclz %v1011_v10  ;;  %v341_v3 = vsel %vm329_vm15, %v323_v8, %v340_v18  ;;  %v331_v33 = vsel %vm327_vm14, %v311_v13, %v314_v5  ;;  %v333_v34 = vsel %vm329_vm15, %v317_v51, %v332_v15 }
  0x4a   :  { %v258_v19 = vsub.s32 0, %v1311_v12  ;;  %v338_v35 = vsel %vm328_vm0, %v335_v16, %v337_v17  ;;  %v342_v46 = vsel %vm328_vm0, %v339_v20, %v341_v3  ;;  %v408_v52 = vadd.s32 1, %v1022_v28 }
  0x4b   :  { %v1327_v37 = vmul.u32.u64.low %v343_v26, %v342_v46  ;;  %v1328_v38 = vmul.u32.u64.high %v343_v26, %v342_v46, %v1327_v37  ;;  %v1012_v42 = vadd.s32 4294967294, %v157_v32  ;;  %v334_v43 = vsel %vm328_vm0, %v331_v33, %v333_v34 }
  0x4c   :  { %v1015_v44 = vmin.u32 %v258_v19, %v1311_v12  ;;  %v1331_v45 = vmul.u32.u64.low %v343_v26, %v338_v35  ;;  %v1332_v48 = vmul.u32.u64.high %v343_v26, %v338_v35, %v1331_v45  ;;  %vm409_vm1 = vcmp.gt.s32.totalorder %v408_v52, 0 }
  0x4d   :  { %v410_v47 = vsel %vm409_vm1, %v408_v52, 0  ;;  %v350_v54 = vmul.u32 %v343_v26, %v334_v43  ;;  %vm1013_vm3 = vcmp.lt.s32.totalorder %v1012_v42, 0  ;;  %v398_v58 = vand.u32 2147483647, %v1280_v30 }
  0x4e   :  { %v260_v49 = vclz %v1015_v44  ;;  %vm352_vm2 = vc.u32 %v1328_v38, %v1331_v45  ;;  %v353_v56 = vadd.s32 1, %v1332_v48  ;;  %v412_v60 = vand.u32 31, %v410_v47 }
  0x4f   :  { %v160_v5 = vsel %vm1013_vm3, 0, %v1012_v42  ;;  %v405_v6 = vand.u32 8388607, %v398_v58  ;;  %v145_v50 = vadd.s32 %v1241_v41, %v1238_v40  ;;  %v411_v16 = vshrl.u32 %v410_v47, 5 }
  0x50   :  { %v1016_v2 = vadd.s32 4294967294, %v260_v49  ;;  %v354_v39 = vsel %vm352_vm2, %v353_v56, %v1332_v48  ;;  %v413_v4 = vsub.s32 32, %v412_v60  ;;  %v415_v8 = vshll.u32 %v1151_v55, %v412_v60 }
  0x51   :  { %v355_v51 = vadd.s32 %v354_v39, %v350_v54  ;;  %v165_v11 = vsub.s32 4294967266, %v160_v5  ;;  %v418_v13 = vshll.u32 %v1152_v57, %v412_v60  ;;  %v421_v17 = vshll.u32 %v1153_v59, %v412_v60 }
  0x52   :  { %v416_v10 = vshrl.u32 %v1152_v57, %v413_v4  ;;  %vm1017_vm4 = vcmp.lt.s32.totalorder %v1016_v2, 0  ;;  %v419_v14 = vshrl.u32 %v1153_v59, %v413_v4  ;;  %v422_v18 = vshrl.u32 %v1154_v61, %v413_v4 }
  0x53   :  { %v356_v7 = vadd.s32 536870912, %v355_v51  ;;  %v248_v40 = vadd.s32 %v1270_v21, %v1276_v29  ;;  %v406_v41 = vor.u32 8388608, %v405_v6  ;;  %v424_v19 = vshll.u32 %v1154_v61, %v412_v60 }
  0x54   :  { %v425_v20 = vshrl.u32 %v1155_v63, %v413_v4  ;;  %v161_v26 = vsub.s32 32, %v160_v5  ;;  %v263_v28 = vsel %vm1017_vm4, 0, %v1016_v2  ;;  %v417_v32 = vor.u32 %v416_v10, %v415_v8 }
  0x55   :  { %v1348_v15 = vshrl.u32 %v356_v7, 30  ;;  %v420_v3 = vor.u32 %v419_v14, %v418_v13  ;;  %v427_v34 = vshll.u32 %v1155_v63, %v412_v60  ;;  %v428_v59 = vshrl.u32 %v1156_v9, %v413_v4 }
  0x56   :  { %v426_v33 = vor.u32 %v425_v20, %v424_v19  ;;  %v166_v35 = vadd.s32 127, %v165_v11  ;;  %v423_v21 = vor.u32 %v422_v18, %v421_v17  ;;  %vm430_vm5 = vcmp.lt.s32.totalorder %v411_v16, 1 }
  0x57   :  { %v358_v57 = vshll.u32 %v1348_v15, 30  ;;  %v162_v61 = vshll.u32 %v1290_v36, %v160_v5  ;;  %v268_v29 = vsub.s32 4294967266, %v263_v28  ;;  %v414_v46 = vshrl.u32 %v1151_v55, %v413_v4 }
  0x58   :  { %vm433_vm6 = vcmp.lt.s32.totalorder %v411_v16, 4  ;;  %v429_v52 = vor.u32 %v428_v59, %v427_v34  ;;  %vm432_vm7 = vcmp.lt.s32.totalorder %v411_v16, 3  ;;  %vm431_vm8 = vcmp.lt.s32.totalorder %v411_v16, 2 }
  0x59   :  { %v1359_v44 = vsub.s32 %v355_v51, %v358_v57  ;;  %v435_v42 = vsel %vm433_vm6, %v423_v21, 2102212464  ;;  %v438_v63 = vsel %vm430_vm5, %v417_v32, %v420_v3  ;;  %v439_v9 = vsel %vm433_vm6, %v426_v33, 920167782 }
  0x5a   :  { %v446_v43 = vshll.u32 %v406_v41, 8  ;;  %v163_v48 = vshrl.u32 %v145_v50, %v161_v26  ;;  %v167_v49 = vshll.u32 %v166_v35, 23  ;;  %v264_v47 = vsub.s32 32, %v263_v28 }
  0x5b   :  { %v361_v37 = vsub.s32 0, %v1359_v44  ;;  %v434_v55 = vsel %vm430_vm5, %v414_v46, %v417_v32  ;;  %v436_v54 = vsel %vm432_vm7, %v420_v3, %v435_v42  ;;  %v440_v56 = vsel %vm432_vm7, %v423_v21, %v439_v9 }
  0x5c   :  { %v442_v60 = vsel %vm430_vm5, %v420_v3, %v423_v21  ;;  %v269_v2 = vadd.s32 127, %v268_v29  ;;  %v441_v4 = vsel %vm431_vm8, %v438_v63, %v440_v56  ;;  %v443_v5 = vsel %vm433_vm6, %v429_v52, 1326507024 }
  0x5d   :  { %v1019_v36 = vmin.u32 %v361_v37, %v1359_v44  ;;  %v444_v51 = vsel %vm432_vm7, %v426_v33, %v443_v5  ;;  %v1375_v6 = vmul.u32.u64.low %v446_v43, %v441_v4  ;;  %v1376_v50 = vmul.u32.u64.high %v446_v43, %v441_v4, %v1375_v6 }
  0x5e   :  { %v437_v8 = vsel %vm431_vm8, %v434_v55, %v436_v54  ;;  %v445_v10 = vsel %vm431_vm8, %v442_v60, %v444_v51  ;;  %v164_v11 = vor.u32 %v163_v48, %v162_v61  ;;  %v168_v13 = vor.u32 4788187, %v167_v49 }
  0x5f   :  { %v363_v39 = vclz %v1019_v36  ;;  %v1380_v14 = vmul.u32.u64.low %v446_v43, %v445_v10  ;;  %v1381_v17 = vmul.u32.u64.high %v446_v43, %v445_v10, %v1380_v14  ;;  %v265_v18 = vshll.u32 %v1311_v12, %v263_v28 }
  0x60   :  { %v266_v41 = vshrl.u32 %v248_v40, %v264_v47  ;;  %v270_v19 = vshll.u32 %v269_v2, 23  ;;  %v351_v20 = vadd.s32 %v1331_v45, %v1328_v38  ;;  %v453_v57 = vmul.u32 %v446_v43, %v437_v8 }
  0x61   :  { %v1020_v7 = vadd.s32 4294967294, %v363_v39  ;;  %v456_v32 = vadd.s32 1, %v1376_v50  ;;  %v171_v33 = vcvt.s32.f32 %v164_v11  ;;  %vm455_vm10 = vc.u32 %v1381_v17, %v1375_v6 }
  0x62   :  { %v267_v34 = vor.u32 %v266_v41, %v265_v18  ;;  %v271_v59 = vor.u32 4788187, %v270_v19  ;;  %v169_v40 = vand.u32 2147483647, %v168_v13  ;;  %vm91_vm11 = vcmp.lt.s32.totalorder %v1186_v22, 0 }
  0x63   :  { %vm1021_vm9 = vcmp.lt.s32.totalorder %v1020_v7, 0  ;;  %v457_v12 = vsel %vm455_vm10, %v456_v32, %v1376_v50  ;;  %vm194_vm12 = vcmp.lt.s32.totalorder %v1188_v23, 0  ;;  %vm1397_vm13 = vcmp.le.f32.partialorder %v89_v25, 0.7853982 }
  0x64   :  { %v366_v26 = vsel %vm1021_vm9, 0, %v1020_v7  ;;  %v458_v61 = vadd.s32 %v457_v12, %v453_v57  ;;  %v272_v29 = vand.u32 2147483647, %v271_v59  ;;  %v274_v46 = vcvt.s32.f32 %v267_v34 }
  0x65   :  { %v367_v3 = vsub.s32 32, %v366_v26  ;;  %v371_v16 = vsub.s32 4294967266, %v366_v26  ;;  %v368_v28 = vshll.u32 %v1359_v44, %v366_v26  ;;  %v172_v37 = vmul.f32 %v171_v33, %v169_v40 }
  0x66   :  { %v459_v45 = vadd.s32 536870912, %v458_v61  ;;  %v275_v43 = vmul.f32 %v274_v46, %v272_v29  ;;  %vm1408_vm14 = vcmp.le.f32.partialorder %v192_v27, 0.7853982  ;;  %vm297_vm15 = vcmp.lt.s32.totalorder %v1190_v24, 0 }
  0x67   :  { %v372_v35 = vadd.s32 127, %v371_v16  ;;  %v369_v21 = vshrl.u32 %v351_v20, %v367_v3  ;;  %v173_v48 = vxor.u32 2147483648, %v172_v37  ;;  %v454_v8 = vadd.s32 %v1375_v6, %v1381_v17 }
  0x68   :  { %v1390_v63 = vshrl.u32 %v459_v45, 30  ;;  %v276_v55 = vxor.u32 2147483648, %v275_v43  ;;  %v175_v27 = vsub.s32 4, %v1282_v31  ;;  %vm1422_vm1 = vcmp.le.f32.partialorder %v295_v53, 0.7853982 }
  0x69   :  { %v373_v38 = vshll.u32 %v372_v35, 23  ;;  %v370_v52 = vor.u32 %v369_v21, %v368_v28  ;;  %v174_v56 = vsel %vm91_vm11, %v173_v48, %v172_v37  ;;  %v278_v19 = vsub.s32 4, %v1304_v62 }
  0x6a   :  { %v461_v9 = vshll.u32 %v1390_v63, 30  ;;  %v177_v4 = vsel %vm1397_vm13, %v1186_v22, %v174_v56  ;;  %v277_v25 = vsel %vm194_vm12, %v276_v55, %v275_v43  ;;  %v176_v20 = vsel %vm91_vm11, %v175_v27, %v1282_v31 }
  0x6b   :  { %v374_v42 = vor.u32 4788187, %v373_v38  ;;  %v377_v47 = vcvt.s32.f32 %v370_v52  ;;  %1068 = vcosq.f32 %v177_v4  ;;  %v280_v7 = vsel %vm1408_vm14, %v1188_v23, %v277_v25 }
  0x6c   :  { %v462_v36 = vsub.s32 %v458_v61, %v461_v9  ;;  %1070 = vsinq.f32 %v177_v4  ;;  %v279_v32 = vsel %vm194_vm12, %v278_v19, %v1304_v62  ;;  %v381_v3 = vsub.s32 4, %v1348_v15 }
  0x6d   :  { %v375_v49 = vand.u32 2147483647, %v374_v42  ;;  %1072 = vcosq.f32 %v280_v7  ;;  %v178_v34 = vsel %vm1397_vm13, 0, %v176_v20  ;;  %v281_v31 = vsel %vm1408_vm14, 0, %v279_v32 }
  0x6e   :  { %v464_v44 = vsub.s32 0, %v462_v36  ;;  %1074 = vsinq.f32 %v280_v7  ;;  %v1441_v35 = vand.u32 3, %v178_v34  ;;  %v382_v12 = vsel %vm297_vm15, %v381_v3, %v1348_v15 }
  0x6f   :  { %v378_v60 = vmul.f32 %v377_v47, %v375_v49  ;;  %v628_v40 = vadd.s32 3, %v178_v34  ;;  %vm400_vm2 = vcmp.lt.s32.totalorder %v1280_v30, 0  ;;  %v484_v21 = vsub.s32 4, %v1390_v63 }
  0x70   :  { %v1023_v2 = vmin.u32 %v464_v44, %v462_v36  ;;  %vm1452_vm3 = vcmp.le.f32.partialorder %v398_v58, 0.7853982  ;;  %v732_v29 = vadd.s32 3, %v281_v31  ;;  %vm183_vm4 = vcmp.lt.s32.totalorder %v1441_v35, 2 }
  0x71   :  { %v379_v51 = vxor.u32 2147483648, %v378_v60  ;;  %v285_v46 = vand.u32 3, %v281_v31  ;;  %v384_v15 = vsel %vm1422_vm1, 0, %v382_v12  ;;  %vm184_vm5 = vcmp.eq.s32.totalorder %v1441_v35, 0 }
  0x72   :  { %v466_v39 = vclz %v1023_v2  ;;  %vm187_vm6 = vcmp.eq.s32.totalorder %v1441_v35, 2  ;;  %v629_v58 = vand.u32 3, %v628_v40  ;;  %v1463_v9 = vand.u32 3, %v384_v15 }
  0x73   :  { %v380_v13 = vsel %vm297_vm15, %v379_v51, %v378_v60  ;;  %v485_v43 = vsel %vm400_vm2, %v484_v21, %v1390_v63  ;;  %v733_v47 = vand.u32 3, %v732_v29  ;;  %vm181_vm7 = vweird.f32 %v1186_v22 }
  0x74   :  { %v1024_v50 = vadd.s32 4294967294, %v466_v39  ;;  %v383_v53 = vsel %vm1422_vm1, %v1190_v24, %v380_v13  ;;  %vm286_vm9 = vcmp.lt.s32.totalorder %v285_v46, 2  ;;  %vm287_vm10 = vcmp.eq.s32.totalorder %v285_v46, 0 }
  0x75   :  { %1076 = vcosq.f32 %v383_v53  ;;  %v487_v63 = vsel %vm1452_vm3, 0, %v485_v43  ;;  %vm631_vm11 = vcmp.eq.s32.totalorder %v629_v58, 0  ;;  %vm290_vm12 = vcmp.eq.s32.totalorder %v285_v46, 2 }
  0x76   :  { %vm1025_vm0 = vcmp.lt.s32.totalorder %v1024_v50, 0  ;;  %1078 = vsinq.f32 %v383_v53  ;;  %vm390_vm13 = vcmp.eq.s32.totalorder %v1463_v9, 0  ;;  %v1157_v60 = vmov 1966171168  }
  0x77   :  { %v469_v11 = vsel %vm1025_vm0, 0, %v1024_v50  ;;  %v508_v2 = vunpack.c.l.s4 %v1157_v60  ;;  %vm634_vm14 = vcmp.eq.s32.totalorder %v629_v58, 2  ;;  %vm735_vm15 = vcmp.eq.s32.totalorder %v733_v47, 0 }
  0x78   :  { %v470_v14 = vsub.s32 32, %v469_v11  ;;  %v471_v18 = vshll.u32 %v462_v36, %v469_v11  ;;  %v474_v41 = vsub.s32 4294967266, %v469_v11  ;;  %v1069_v28 = vpop.eup %1068  ;;  %v836_v36 = vadd.s32 3, %v384_v15 }
  0x79   :  { %v1071_v61 = vpop.eup %1070  ;;  %v188_v49 = vxor.u32 2147483648, %v1069_v28  ;;  %vm738_vm0 = vcmp.eq.s32.totalorder %v733_v47, 2  ;;  %vm630_vm1 = vcmp.lt.s32.totalorder %v629_v58, 2  ;;  %v940_v50 = vadd.s32 3, %v487_v63 }
  0x7a   :  { %v472_v6 = vshrl.u32 %v454_v8, %v470_v14  ;;  %v475_v17 = vadd.s32 127, %v474_v41  ;;  %v1073_v37 = vpop.eup %1072  ;;  %v185_v44 = vxor.u32 2147483648, %v1071_v61  ;;  %v837_v5 = vand.u32 3, %v836_v36 }
  0x7b   :  { %v1075_v42 = vpop.eup %1074  ;;  %v291_v54 = vxor.u32 2147483648, %v1073_v37  ;;  %v189_v4 = vsel %vm187_vm6, %v188_v49, %v1071_v61  ;;  %v636_v27 = vsel %vm634_vm14, %v188_v49, %v1071_v61  ;;  %vm393_vm6 = vcmp.eq.s32.totalorder %v1463_v9, 2 }
  0x7c   :  { %v473_v26 = vor.u32 %v472_v6, %v471_v18  ;;  %v476_v57 = vshll.u32 %v475_v17, 23  ;;  %v288_v55 = vxor.u32 2147483648, %v1075_v42  ;;  %v186_v25 = vsel %vm184_vm5, %v1069_v28, %v185_v44 }
  0x7d   :  { %v633_v51 = vsel %vm631_vm11, %v1069_v28, %v185_v44  ;;  %v292_v8 = vsel %vm290_vm12, %v291_v54, %v1075_v42  ;;  %v740_v14 = vsel %vm738_vm0, %v291_v54, %v1075_v42  ;;  %v190_v18 = vsel %vm183_vm4, %v186_v25, %v189_v4 }
  0x7e   :  { %v477_v16 = vor.u32 4788187, %v476_v57  ;;  %v480_v33 = vcvt.s32.f32 %v473_v26  ;;  %v289_v7 = vsel %vm287_vm10, %v1073_v37, %v288_v55  ;;  %v737_v13 = vsel %vm735_vm15, %v1073_v37, %v288_v55 }
  0x7f   :  { %vm839_vm5 = vcmp.eq.s32.totalorder %v837_v5, 0  ;;  %vm842_vm8 = vcmp.eq.s32.totalorder %v837_v5, 2  ;;  %v293_v41 = vsel %vm286_vm9, %v289_v7, %v292_v8  ;;  %v491_v19 = vand.u32 3, %v487_v63 }
  0x80   :  { %v478_v59 = vand.u32 2147483647, %v477_v16  ;;  %v637_v6 = vsel %vm630_vm1, %v633_v51, %v636_v27  ;;  %v941_v17 = vand.u32 3, %v940_v50  ;;  %vm389_vm10 = vcmp.lt.s32.totalorder %v1463_v9, 2 }
  0x81   :  { %v509_v53 = vunpack.c.0.s8 %v508_v2  ;;  %vm838_vm11 = vcmp.lt.s32.totalorder %v837_v5, 2  ;;  %v191_v16 = vsel %vm181_vm7, nan, %v190_v18  ;;  %vm1530_vm4 = vweird.f32 %v1188_v23 }
  0x82   :  { %v481_v62 = vmul.f32 %v480_v33, %v478_v59  ;;  %v1077_v56 = vpop.eup %1076  ;;  %v294_v33 = vsel %vm1530_vm4, nan, %v293_v41  ;;  %vm490_vm9 = vweird.f32 %v1280_v30  ;;  %v638_v34 = vsel %vm181_vm7, nan, %v637_v6  ;;  %vm1531_vm15 = vmmov %vm1530_vm4 }
  0x83   :  { %v1079_v39 = vpop.eup %1078  ;;  %v394_v11 = vxor.u32 2147483648, %v1077_v56  ;;  %vm493_vm12 = vcmp.eq.s32.totalorder %v491_v19, 0  ;;  %vm496_vm14 = vcmp.eq.s32.totalorder %v491_v19, 2  ;;  %vm492_vm0 = vcmp.lt.s32.totalorder %v491_v19, 2 }
  0x84   :  { %v482_v45 = vxor.u32 2147483648, %v481_v62  ;;  %v391_v10 = vxor.u32 2147483648, %v1079_v39  ;;  %v512_v22 = vsub.s32 %v509_v53, %v1179_v1  ;;  %vm942_vm7 = vcmp.lt.s32.totalorder %v941_v17, 2 }
  0x85   :  { %v395_v57 = vsel %vm393_vm6, %v394_v11, %v1079_v39  ;;  %v844_v3 = vsel %vm842_vm8, %v394_v11, %v1079_v39  ;;  %vm943_vm8 = vcmp.eq.s32.totalorder %v941_v17, 0  ;;  %v505_v61 = vcombine.low %v191_v16, %v294_v33 }
  0x86   :  { %v483_v52 = vsel %vm400_vm2, %v482_v45, %v481_v62  ;;  %vm387_vm2 = vweird.f32 %v1190_v24  ;;  %v392_v26 = vsel %vm390_vm13, %v1077_v56, %v391_v10  ;;  %v841_v32 = vsel %vm839_vm5, %v1077_v56, %v391_v10 }
  0x87   :  { %v486_v48 = vsel %vm1452_vm3, %v1280_v30, %v483_v52  ;;  %vm734_vm3 = vcmp.lt.s32.totalorder %v733_v47, 2  ;;  %vm946_vm13 = vcmp.eq.s32.totalorder %v941_v17, 2  ;;  %v396_v12 = vsel %vm389_vm10, %v392_v26, %v395_v57 }
  0x88   :  { %1080 = vcosq.f32 %v486_v48  ;;  %v741_v20 = vsel %vm734_vm3, %v737_v13, %v740_v14  ;;  %v845_v40 = vsel %vm838_vm11, %v841_v32, %v844_v3  ;;  %v397_v23 = vsel %vm387_vm2, nan, %v396_v12 }
  0x89   :  { %1082 = vsinq.f32 %v486_v48  ;;  %v742_v35 = vsel %vm1531_vm15, nan, %v741_v20  ;;  %v846_v46 = vsel %vm387_vm2, nan, %v845_v40  ;;  %v513_v9 = vrot.slane %v505_v61, %v512_v22 }
  0x8a   :  { %v955_v45 = vcombine.low %v638_v34, %v742_v35  ;;  %vm532_vm1 = vcmp.lt.s32.totalorder %v27_v0, 512 }
  0x8c   :  { %v963_v48 = vrot.slane %v955_v45, %v512_v22 }
  0x95   :  { %v1081_v59 = vpop.eup %1080 }
  0x96   :  { %v1083_v31 = vpop.eup %1082  ;;  %v497_v62 = vxor.u32 2147483648, %v1081_v59 }
  0x97   :  { %v494_v28 = vxor.u32 2147483648, %v1083_v31 }
  0x98   :  { %v498_v21 = vsel %vm496_vm14, %v497_v62, %v1083_v31  ;;  %v948_v38 = vsel %vm946_vm13, %v497_v62, %v1083_v31 }
  0x99   :  { %v495_v29 = vsel %vm493_vm12, %v1081_v59, %v494_v28  ;;  %v945_v15 = vsel %vm943_vm8, %v1081_v59, %v494_v28 }
  0x9a   :  { %v499_v37 = vsel %vm492_vm0, %v495_v29, %v498_v21  ;;  %v949_v52 = vsel %vm942_vm7, %v945_v15, %v948_v38 }
  0x9b   :  { %v500_v58 = vsel %vm490_vm9, nan, %v499_v37  ;;  %v950_v1 = vsel %vm490_vm9, nan, %v949_v52 }
  0x9c   :  { %v506_v42 = vcombine.low %v397_v23, %v500_v58  ;;  %v956_v43 = vcombine.low %v846_v46, %v950_v1 }
  0x9e   :  { %v520_v49 = vrot.slane %v506_v42, %v512_v22  ;;  %v970_v47 = vrot.slane %v956_v43, %v512_v22 }
  0xa0   :  { %v521_v36 = vcombine.low %v513_v9, %v520_v49  ;;  %v971_v24 = vcombine.low %v963_v48, %v970_v47 }
  0xa2   :  { %v528_v44 = vrot.slane %v521_v36, %v512_v22  ;;  %v978_v55 = vrot.slane %v971_v24, %v512_v22 }
  0xa4   :  { %534 = vst.msk [vmem:[#allocation5] sm:$0xf] %vm532_vm1, %v528_v44  ;;  %980 = vst.msk [vmem:[#allocation6] sm:$0xf] %vm532_vm1, %v978_v55 }
  0xa5   :  { %1115 = shalt.err (!%p1112_p9)
}
  0xa6   :  { %990 = dma.vmem_to_hbm [thread:$0]  %s988_s14, 64, %s1520_s1, [#allocation4]  }
  0xa7   :  { %s1124_s20 = scalar_lea.vmem %s998_s16, 64  ;;  %p1129_p11 = scmp.lt.s32.totalorder %s998_s16, %s998_s16 }
  0xa8   :  { %p1125_p10 = scmp.ne.s32.totalorder %s998_s16, %s1124_s20  ;;  %p1130_p12 = scmp.lt.s32.totalorder %s1124_s20, %s1124_s20 }
  0xaa   :  { %p1131_p13 = por %p1130_p12, %p1129_p11 }
  0xac   :  { %p1132_p0 = pnand %p1131_p13, %p1125_p10 }
  0xae   :  { %1135 = shalt.err (!%p1132_p0)
}
  0xaf   :  { %1000 = dma.vmem_to_hbm [thread:$0]  %s998_s16, 64, %s1521_s2, [#allocation7]  }
  0xb0   :  { %1146 = dma.done.wait [#allocation4], 64  }
  0xb1   :  { %1147 = vsyncadd [#allocation4], 4294967232 }
  0xb2   :  { %1148 = dma.done.wait [#allocation7], 64  }
  0xb3   :  { %1149 = vsyncadd [#allocation7], 4294967232 }
  0xb4   :  { %1007 = vsyncpa [#allocation3], 1 }
  0xb5   :  { %1008 = vsyncpa [#allocation4], 1 }
  0xb6   :  { %1009 = vsyncpa [#allocation7], 1 }

</bundles_post_ra>
